<compile_context>
chip_gen: v6e
topology: v6e:2x2x1
jax: 0.10.0
libtpu: 0.0.40
codegen_flags: <defaults>
</compile_context>

<pallas_src>
import math

import jax
import jax.numpy as jnp
from jax import lax
from jax.experimental import pallas as pl
from jax.experimental.pallas import tpu as pltpu

D_MODEL = 32
N_HEAD = 4
EPS = 1e-5


def _layernorm(v):
    # Affine-free LayerNorm (gamma/beta folded into the downstream projection).
    mu = jnp.mean(v, axis=-1, keepdims=True)
    d = v - mu
    var = jnp.mean(d * d, axis=-1, keepdims=True)
    return d * lax.rsqrt(var + EPS)


def _softmax_approx(s):
    # Internal softmax only: approximate reciprocal runs on the otherwise idle EUP.
    p = jnp.exp(s - jnp.max(s, axis=-1, keepdims=True))
    return p * pl.reciprocal(jnp.sum(p, axis=-1, keepdims=True), approx=True)


def decoder_block_kernel(x_ref, y_ref, w_ref, b_ref, sel_ref, out_x_ref, out_w_ref):
    E = D_MODEL
    H = N_HEAD
    f32 = jnp.float32

    x = x_ref[...]                  # (L, E)
    yf = y_ref[...]                 # (L*S, E)  pre-flattened memory
    W = w_ref[...]                  # (E, 16E)  packed weight slab (LN/scale folded)
    B = b_ref[...]                  # (8, 4E)   packed bias slab   (LN folded)
    SEL = sel_ref[...]              # (3*L*H + L + S, max(E, L*S)) selectors / mask

    L = x.shape[0]
    S = yf.shape[0] // L
    LH = L * H

    # ----- static slices of the packed weight slab -----
    sa_in   = W[:, 0:3 * E]          # fused self-attn QKV in-proj (ln1 + scale folded)
    sa_wo   = W[:, 3 * E:4 * E]
    ca_wq   = W[:, 4 * E:5 * E]      # cross-attn Q (ln2 + scale folded)
    ca_wkv  = W[:, 5 * E:7 * E]      # fused cross-attn K|V
    ca_wo   = W[:, 7 * E:8 * E]
    mlp_w1  = W[:, 8 * E:12 * E]     # ln3 folded
    mlp_w2t = W[:, 12 * E:16 * E]    # second MLP weight, transposed (lane-dense)

    # ----- static slices of the packed bias slab -----
    b_sa_in  = B[0:1, 0:3 * E]
    b_sa_out = B[1:2, 0:E]
    b_ca_q   = B[2:3, 0:E]
    b_ca_kv  = B[3:4, 0:2 * E]
    b_ca_out = B[4:5, 0:E]
    b_mlp1   = B[5:6, 0:4 * E]
    b_mlp2   = B[6:7, 0:E]

    # ----- host-precomputed selectors / masks (no in-kernel iota/div/compare) -----
    rep_sel    = SEL[0:LH, 0:L]                                # (L*H, L): row i -> token i//H
    hmask      = SEL[LH:2 * LH, 0:E]                           # (L*H, E): 0/1 head-column mask
    head_sel   = SEL[2 * LH:2 * LH + L, 0:LH]                  # (L, L*H): sum heads per token
    col_sel    = SEL[2 * LH + L:2 * LH + L + S, 0:L * S]       # (S, L*S): (1/H) * [j%S == s]
    cross_bias = SEL[2 * LH + L + S:3 * LH + L + S, 0:L * S]   # (L*H, L*S): 0 / -1e30

    nt = (((1,), (1,)), ((), ()))   # contract last dims of both operands (A @ B.T) on the MXU

    # ---------------- self-attention: x = x + MHA(ln_1(x)) ----------------
    xn = _layernorm(x)
    qkv = jnp.dot(xn, sa_in, preferred_element_type=f32) + b_sa_in        # (L, 3E)
    q = qkv[:, 0:E]
    k = qkv[:, E:2 * E]
    v = qkv[:, 2 * E:3 * E]
    qbd = jnp.dot(rep_sel, q, preferred_element_type=f32) * hmask         # (L*H, E) block-diag queries
    s = lax.dot_general(qbd, k, nt, preferred_element_type=f32)           # (L*H, L)
    p = _softmax_approx(s)                                                # one softmax for all heads
    o = jnp.dot(p, v, preferred_element_type=f32) * hmask                 # (L*H, E), off-head cols zeroed
    sa = jnp.dot(head_sel, o, preferred_element_type=f32)                 # (L, E) head concat via MXU
    sa = jnp.dot(sa, sa_wo, preferred_element_type=f32) + b_sa_out
    x = x + sa

    # --- cross-attention: query length 1 per token, "batch" = L (torch permute) ---
    xn = _layernorm(x)
    qc = jnp.dot(xn, ca_wq, preferred_element_type=f32) + b_ca_q          # (L, E)
    kv = jnp.dot(yf, ca_wkv, preferred_element_type=f32) + b_ca_kv        # (L*S, 2E) fused K|V, flat
    kc = kv[:, 0:E]
    vc = kv[:, E:2 * E]
    qcbd = jnp.dot(rep_sel, qc, preferred_element_type=f32) * hmask       # (L*H, E)
    sc = lax.dot_general(qcbd, kc, nt, preferred_element_type=f32) + cross_bias   # (L*H, L*S)
    # Exact softmax: these probabilities are an externally visible output.
    pc = jnp.exp(sc - jnp.max(sc, axis=-1, keepdims=True))
    pc = pc / jnp.sum(pc, axis=-1, keepdims=True)
    hw = jnp.dot(head_sel, pc, preferred_element_type=f32)                # (L, L*S) head-summed probs
    out_w_ref[...] = lax.dot_general(hw, col_sel, nt,
                                     preferred_element_type=f32)          # (L, S) head-averaged
    oc = jnp.dot(pc, vc, preferred_element_type=f32) * hmask              # (L*H, E)
    ca = jnp.dot(head_sel, oc, preferred_element_type=f32)                # (L, E)
    ca = jnp.dot(ca, ca_wo, preferred_element_type=f32) + b_ca_out
    x = x + ca

    # ---------------------- MLP: x = x + MLP(ln_3(x)) ----------------------
    xn = _layernorm(x)
    h1 = jnp.maximum(jnp.dot(xn, mlp_w1, preferred_element_type=f32) + b_mlp1, 0.0)
    mlp = lax.dot_general(h1, mlp_w2t, nt, preferred_element_type=f32) + b_mlp2
    out_x_ref[...] = x + mlp


@jax.jit
def decoder_block(x, y, w_slab, bias_slab, sel_slab):
    L, E = x.shape
    S = y.shape[1]
    yf = y.reshape(L * S, E)   # free XLA reshape: kernel never re-lays-out y
    vmem = lambda: pl.BlockSpec(memory_space=pltpu.MemorySpace.VMEM)
    out_x, attn_w = pl.pallas_call(
        decoder_block_kernel,
        in_specs=[vmem() for _ in range(5)],
        out_specs=(vmem(), vmem()),
        out_shape=(jax.ShapeDtypeStruct((L, E), jnp.float32),
                   jax.ShapeDtypeStruct((L, S), jnp.float32)),
        # No grid: single invocation, no per-step pipeline overhead at this size.
    )(x, yf, w_slab, bias_slab, sel_slab)
    return out_x, attn_w.reshape(L, 1, S)


def pack_params(P):
    """Fold LN affines + attention scale into projections; pack into two slabs."""
    E = D_MODEL
    H = N_HEAD
    dh = E // H
    scale = 1.0 / math.sqrt(dh)

    def fold_ln(g, b, W, bias):
        # (n*g + b) @ W + bias  ==  n @ (g[:,None]*W) + (b @ W + bias)
        g = jnp.asarray(g).reshape(E)
        bb = jnp.asarray(b).reshape(E)
        return g[:, None] * W, bb @ W + bias

    # self-attention in-projection (ln1 + 1/sqrt(dh) folded; q columns scaled)
    sa_W = jnp.concatenate([P["sa_wq"] * scale, P["sa_wk"], P["sa_wv"]], axis=1)   # (E, 3E)
    sa_b = jnp.concatenate([P["sa_bq"].reshape(E) * scale,
                            P["sa_bk"].reshape(E), P["sa_bv"].reshape(E)])
    sa_W, sa_b = fold_ln(P["ln1_w"], P["ln1_b"], sa_W, sa_b)

    # cross-attention (ln2 folds into the query projection only; y is un-normalized)
    ca_Wq, ca_bq = fold_ln(P["ln2_w"], P["ln2_b"],
                           P["ca_wq"] * scale, P["ca_bq"].reshape(E) * scale)
    ca_Wkv = jnp.concatenate([P["ca_wk"], P["ca_wv"]], axis=1)                     # (E, 2E)
    ca_bkv = jnp.concatenate([P["ca_bk"].reshape(E), P["ca_bv"].reshape(E)])

    # MLP (ln3 folded into the first linear); second weight stored transposed (lane-dense)
    mlp_W1, mlp_b1 = fold_ln(P["ln3_w"], P["ln3_b"], P["mlp_w1"], P["mlp_b1"].reshape(4 * E))
    mlp_W2T = P["mlp_w2"].T                                                        # (E, 4E)

    w_slab = jnp.concatenate(
        [sa_W, P["sa_wo"], ca_Wq, ca_Wkv, P["ca_wo"], mlp_W1, mlp_W2T],
        axis=1).astype(jnp.float32)                                                # (E, 16E) = (32, 512)

    def row(v, width=4 * E):
        v = jnp.asarray(v).reshape(-1)
        return jnp.pad(v, (0, width - v.shape[0])).reshape(1, width)

    bias_slab = jnp.concatenate(
        [row(sa_b), row(P["sa_bo"]), row(ca_bq), row(ca_bkv), row(P["ca_bo"]),
         row(mlp_b1), row(P["mlp_b2"]), jnp.zeros((1, 4 * E), jnp.float32)],
        axis=0).astype(jnp.float32)                                                # (8, 128)
    return w_slab, bias_slab


def build_sel(L, S):
    """Host-precomputed selectors + block-diagonal cross-attention mask."""
    E = D_MODEL
    H = N_HEAD
    dh = E // H
    width = max(E, L * S, L * H, L)

    tok_of_row = jnp.arange(L * H) // H          # token index of each (token, head) row
    head_of_row = jnp.arange(L * H) % H

    rep_sel = (tok_of_row[:, None] == jnp.arange(L)[None, :]).astype(jnp.float32)          # (L*H, L)
    hmask = (jnp.arange(E)[None, :] // dh == head_of_row[:, None]).astype(jnp.float32)     # (L*H, E)
    head_sel = (jnp.arange(L)[:, None] == tok_of_row[None, :]).astype(jnp.float32)         # (L, L*H)
    col_sel = (jnp.arange(S)[:, None] ==
               (jnp.arange(L * S) % S)[None, :]).astype(jnp.float32) / H                   # (S, L*S)
    cross_bias = jnp.where(tok_of_row[:, None] == (jnp.arange(L * S) // S)[None, :],
                           0.0, -1e30).astype(jnp.float32)                                 # (L*H, L*S)

    def pad(a):
        return jnp.pad(a, ((0, 0), (0, width - a.shape[1])))

    return jnp.concatenate(
        [pad(rep_sel), pad(hmask), pad(head_sel), pad(col_sel), pad(cross_bias)],
        axis=0).astype(jnp.float32)                                                        # (112, 64)


def make_params(key):
    E = D_MODEL
    ks = jax.random.split(key, 14)

    def lin(k, shape, scale=0.1):
        return jax.random.normal(k, shape, dtype=jnp.float32) * scale

    P = {}
    for i in (1, 2, 3):
        # Non-trivial LN affines so the host-side folding is actually exercised.
        P[f"ln{i}_w"] = 1.0 + lin(jax.random.fold_in(ks[12], i), (1, E))
        P[f"ln{i}_b"] = lin(jax.random.fold_in(ks[13], i), (1, E))

    # self_attn: in_proj_weight (3E, E), in_proj_bias (3E,), out_proj (E, E) + (E,)
    sa_in_w = lin(ks[0], (3 * E, E))
    sa_in_b = lin(ks[1], (3 * E,))
    sa_out_w = lin(ks[2], (E, E))
    sa_out_b = lin(ks[3], (E,))
    P["sa_wq"], P["sa_wk"], P["sa_wv"] = (sa_in_w[:E].T, sa_in_w[E:2 * E].T, sa_in_w[2 * E:].T)
    P["sa_bq"], P["sa_bk"], P["sa_bv"] = (sa_in_b[:E].reshape(1, E),
                                          sa_in_b[E:2 * E].reshape(1, E),
                                          sa_in_b[2 * E:].reshape(1, E))
    P["sa_wo"], P["sa_bo"] = sa_out_w.T, sa_out_b.reshape(1, E)

    # cross_attn
    ca_in_w = lin(ks[4], (3 * E, E))
    ca_in_b = lin(ks[5], (3 * E,))
    ca_out_w = lin(ks[6], (E, E))
    ca_out_b = lin(ks[7], (E,))
    P["ca_wq"], P["ca_wk"], P["ca_wv"] = (ca_in_w[:E].T, ca_in_w[E:2 * E].T, ca_in_w[2 * E:].T)
    P["ca_bq"], P["ca_bk"], P["ca_bv"] = (ca_in_b[:E].reshape(1, E),
                                          ca_in_b[E:2 * E].reshape(1, E),
                                          ca_in_b[2 * E:].reshape(1, E))
    P["ca_wo"], P["ca_bo"] = ca_out_w.T, ca_out_b.reshape(1, E)

    # mlp: Linear(E, 4E) -> ReLU -> Linear(4E, E)
    w1, b1 = lin(ks[8], (4 * E, E)), lin(ks[9], (4 * E,))
    w2, b2 = lin(ks[10], (E, 4 * E)), lin(ks[11], (E,))
    P["mlp_w1"], P["mlp_b1"] = w1.T, b1.reshape(1, 4 * E)
    P["mlp_w2"], P["mlp_b2"] = w2.T, b2.reshape(1, E)
    return P


def reference(x, y, P):
    """Pure-jnp reference (different code path: per-head einsums, plain softmax)."""
    E = x.shape[-1]
    H = N_HEAD
    dh = E // H

    def ln(v, w, b):
        mu = v.mean(-1, keepdims=True)
        var = ((v - mu) ** 2).mean(-1, keepdims=True)
        return (v - mu) / jnp.sqrt(var + EPS) * w + b

    def mha_self(xn):
        q = xn @ P["sa_wq"] + P["sa_bq"]
        k = xn @ P["sa_wk"] + P["sa_bk"]
        v = xn @ P["sa_wv"] + P["sa_bv"]
        qh = q.reshape(-1, H, dh).transpose(1, 0, 2) / math.sqrt(dh)
        kh = k.reshape(-1, H, dh).transpose(1, 0, 2)
        vh = v.reshape(-1, H, dh).transpose(1, 0, 2)
        p = jax.nn.softmax(jnp.einsum("hld,hmd->hlm", qh, kh), axis=-1)
        o = jnp.einsum("hlm,hmd->hld", p, vh).transpose(1, 0, 2).reshape(-1, E)
        return o @ P["sa_wo"] + P["sa_bo"]

    def mha_cross(xn, ym):
        L, S, _ = ym.shape
        q = xn @ P["ca_wq"] + P["ca_bq"]
        k = ym @ P["ca_wk"] + P["ca_bk"]
        v = ym @ P["ca_wv"] + P["ca_bv"]
        qh = q.reshape(L, H, dh) / math.sqrt(dh)
        kh = k.reshape(L, S, H, dh)
        vh = v.reshape(L, S, H, dh)
        p = jax.nn.softmax(jnp.einsum("lhd,lshd->lhs", qh, kh), axis=-1)
        o = jnp.einsum("lhs,lshd->lhd", p, vh).reshape(L, E)
        return o @ P["ca_wo"] + P["ca_bo"], p.mean(axis=1)

    L, S = y.shape[0], y.shape[1]
    x = x + mha_self(ln(x, P["ln1_w"], P["ln1_b"]))
    ca, w = mha_cross(ln(x, P["ln2_w"], P["ln2_b"]), y)
    x = x + ca
    xn = ln(x, P["ln3_w"], P["ln3_b"])
    x = x + (jnp.maximum(xn @ P["mlp_w1"] + P["mlp_b1"], 0.0) @ P["mlp_w2"] + P["mlp_b2"])
    return x, w.reshape(L, 1, S)


if __name__ == "__main__":
    L, S = 8, 8
    key = jax.random.PRNGKey(0)
    kx, ky, kp = jax.random.split(key, 3)
    x = jax.random.normal(kx, (L, D_MODEL), dtype=jnp.float32)
    y = jax.random.normal(ky, (L, S, D_MODEL), dtype=jnp.float32)
    P = make_params(kp)
    w_slab, bias_slab = pack_params(P)
    sel_slab = build_sel(L, S)

    out_x, attn_w = decoder_block(x, y, w_slab, bias_slab, sel_slab)
    out_x = jax.block_until_ready(out_x)
    attn_w = jax.block_until_ready(attn_w)

    ref_x, ref_w = reference(x, y, P)
    assert out_x.shape == (L, D_MODEL), out_x.shape
    assert attn_w.shape == (L, 1, S), attn_w.shape
    assert jnp.allclose(out_x, ref_x, atol=5e-3, rtol=5e-3), \
        float(jnp.max(jnp.abs(out_x - ref_x)))
    assert jnp.allclose(attn_w, ref_w, atol=5e-3, rtol=5e-3), \
        float(jnp.max(jnp.abs(attn_w - ref_w)))
    print("KERNEL_OK")
</pallas_src>

<mosaic_0001>
module attributes {stable_mosaic.version = 11 : i64} {
  func.func @decoder_block_kernel(%arg0: memref<8x32xf32, #tpu.memory_space<vmem>>, %arg1: memref<64x32xf32, #tpu.memory_space<vmem>>, %arg2: memref<32x512xf32, #tpu.memory_space<vmem>>, %arg3: memref<8x128xf32, #tpu.memory_space<vmem>>, %arg4: memref<112x64xf32, #tpu.memory_space<vmem>>, %arg5: memref<8x32xf32, #tpu.memory_space<vmem>>, %arg6: memref<8x8xf32, #tpu.memory_space<vmem>>) attributes {dimension_semantics = [], scalar_prefetch = 0 : i64, scratch_operands = 0 : i64, tpu.core_type = #tpu.core_type<tc>} {
    %c0 = arith.constant 0 : index
    %c0_0 = arith.constant 0 : index
    %0 = vector.load %arg0[%c0, %c0_0] : memref<8x32xf32, #tpu.memory_space<vmem>>, vector<8x32xf32>
    %c0_1 = arith.constant 0 : index
    %c0_2 = arith.constant 0 : index
    %1 = vector.load %arg1[%c0_1, %c0_2] : memref<64x32xf32, #tpu.memory_space<vmem>>, vector<64x32xf32>
    %c0_3 = arith.constant 0 : index
    %c0_4 = arith.constant 0 : index
    %2 = vector.load %arg2[%c0_3, %c0_4] : memref<32x512xf32, #tpu.memory_space<vmem>>, vector<32x512xf32>
    %c0_5 = arith.constant 0 : index
    %c0_6 = arith.constant 0 : index
    %3 = vector.load %arg3[%c0_5, %c0_6] : memref<8x128xf32, #tpu.memory_space<vmem>>, vector<8x128xf32>
    %c0_7 = arith.constant 0 : index
    %c0_8 = arith.constant 0 : index
    %4 = vector.load %arg4[%c0_7, %c0_8] : memref<112x64xf32, #tpu.memory_space<vmem>>, vector<112x64xf32>
    %5 = vector.extract_strided_slice %2 {offsets = [0, 0], sizes = [32, 96], strides = [1, 1]} : vector<32x512xf32> to vector<32x96xf32>
    %6 = vector.extract_strided_slice %2 {offsets = [0, 96], sizes = [32, 32], strides = [1, 1]} : vector<32x512xf32> to vector<32x32xf32>
    %7 = vector.extract_strided_slice %2 {offsets = [0, 128], sizes = [32, 32], strides = [1, 1]} : vector<32x512xf32> to vector<32x32xf32>
    %8 = vector.extract_strided_slice %2 {offsets = [0, 160], sizes = [32, 64], strides = [1, 1]} : vector<32x512xf32> to vector<32x64xf32>
    %9 = vector.extract_strided_slice %2 {offsets = [0, 224], sizes = [32, 32], strides = [1, 1]} : vector<32x512xf32> to vector<32x32xf32>
    %10 = vector.extract_strided_slice %2 {offsets = [0, 256], sizes = [32, 128], strides = [1, 1]} : vector<32x512xf32> to vector<32x128xf32>
    %11 = vector.extract_strided_slice %2 {offsets = [0, 384], sizes = [32, 128], strides = [1, 1]} : vector<32x512xf32> to vector<32x128xf32>
    %12 = vector.extract_strided_slice %3 {offsets = [0, 0], sizes = [1, 96], strides = [1, 1]} : vector<8x128xf32> to vector<1x96xf32>
    %13 = vector.extract_strided_slice %3 {offsets = [1, 0], sizes = [1, 32], strides = [1, 1]} : vector<8x128xf32> to vector<1x32xf32>
    %14 = vector.extract_strided_slice %3 {offsets = [2, 0], sizes = [1, 32], strides = [1, 1]} : vector<8x128xf32> to vector<1x32xf32>
    %15 = vector.extract_strided_slice %3 {offsets = [3, 0], sizes = [1, 64], strides = [1, 1]} : vector<8x128xf32> to vector<1x64xf32>
    %16 = vector.extract_strided_slice %3 {offsets = [4, 0], sizes = [1, 32], strides = [1, 1]} : vector<8x128xf32> to vector<1x32xf32>
    %17 = vector.extract_strided_slice %3 {offsets = [5, 0], sizes = [1, 128], strides = [1, 1]} : vector<8x128xf32> to vector<1x128xf32>
    %18 = vector.extract_strided_slice %3 {offsets = [6, 0], sizes = [1, 32], strides = [1, 1]} : vector<8x128xf32> to vector<1x32xf32>
    %19 = vector.extract_strided_slice %4 {offsets = [0, 0], sizes = [32, 8], strides = [1, 1]} : vector<112x64xf32> to vector<32x8xf32>
    %20 = vector.extract_strided_slice %4 {offsets = [32, 0], sizes = [32, 32], strides = [1, 1]} : vector<112x64xf32> to vector<32x32xf32>
    %21 = vector.extract_strided_slice %4 {offsets = [64, 0], sizes = [8, 32], strides = [1, 1]} : vector<112x64xf32> to vector<8x32xf32>
    %22 = vector.extract_strided_slice %4 {offsets = [72, 0], sizes = [8, 64], strides = [1, 1]} : vector<112x64xf32> to vector<8x64xf32>
    %23 = vector.extract_strided_slice %4 {offsets = [80, 0], sizes = [32, 64], strides = [1, 1]} : vector<112x64xf32> to vector<32x64xf32>
    %cst = arith.constant dense<0.000000e+00> : vector<8xf32>
    %24 = vector.multi_reduction <add>, %0, %cst [1] : vector<8x32xf32> to vector<8xf32>
    %25 = vector.shape_cast %24 : vector<8xf32> to vector<8x1xf32>
    %cst_9 = arith.constant 3.200000e+01 : f32
    %26 = vector.broadcast %cst_9 : f32 to vector<8x1xf32>
    %27 = arith.divf %25, %26 : vector<8x1xf32>
    %28 = vector.broadcast %27 : vector<8x1xf32> to vector<8x32xf32>
    %29 = arith.subf %0, %28 : vector<8x32xf32>
    %30 = arith.mulf %29, %29 : vector<8x32xf32>
    %cst_10 = arith.constant dense<0.000000e+00> : vector<8xf32>
    %31 = vector.multi_reduction <add>, %30, %cst_10 [1] : vector<8x32xf32> to vector<8xf32>
    %32 = vector.shape_cast %31 : vector<8xf32> to vector<8x1xf32>
    %cst_11 = arith.constant 3.200000e+01 : f32
    %33 = vector.broadcast %cst_11 : f32 to vector<8x1xf32>
    %34 = arith.divf %32, %33 : vector<8x1xf32>
    %cst_12 = arith.constant 9.99999974E-6 : f32
    %35 = vector.broadcast %cst_12 : f32 to vector<8x1xf32>
    %36 = arith.addf %34, %35 : vector<8x1xf32>
    %37 = math.rsqrt %36 : vector<8x1xf32>
    %38 = vector.broadcast %37 : vector<8x1xf32> to vector<8x32xf32>
    %39 = arith.mulf %29, %38 : vector<8x32xf32>
    %cst_13 = arith.constant dense<0.000000e+00> : vector<8x96xf32>
    %40 = tpu.matmul %39, %5, %cst_13 {dimension_numbers = #tpu.dot_dimension_numbers<[1], [0], [0], [1], [0, 0, 1, 1], [], []>} : vector<8x32xf32>, vector<32x96xf32>, vector<8x96xf32> -> vector<8x96xf32>
    %41 = vector.broadcast %12 : vector<1x96xf32> to vector<8x96xf32>
    %42 = arith.addf %40, %41 : vector<8x96xf32>
    %43 = vector.extract_strided_slice %42 {offsets = [0, 0], sizes = [8, 32], strides = [1, 1]} : vector<8x96xf32> to vector<8x32xf32>
    %44 = vector.extract_strided_slice %42 {offsets = [0, 32], sizes = [8, 32], strides = [1, 1]} : vector<8x96xf32> to vector<8x32xf32>
    %45 = vector.extract_strided_slice %42 {offsets = [0, 64], sizes = [8, 32], strides = [1, 1]} : vector<8x96xf32> to vector<8x32xf32>
    %cst_14 = arith.constant dense<0.000000e+00> : vector<32x32xf32>
    %46 = tpu.matmul %19, %43, %cst_14 {dimension_numbers = #tpu.dot_dimension_numbers<[1], [0], [0], [1], [0, 0, 1, 1], [], []>} : vector<32x8xf32>, vector<8x32xf32>, vector<32x32xf32> -> vector<32x32xf32>
    %47 = arith.mulf %46, %20 : vector<32x32xf32>
    %cst_15 = arith.constant dense<0.000000e+00> : vector<32x8xf32>
    %48 = tpu.matmul %47, %44, %cst_15 {dimension_numbers = #tpu.dot_dimension_numbers<[1], [1], [0], [0], [0, 0, 1, 0], [], []>} : vector<32x32xf32>, vector<8x32xf32>, vector<32x8xf32> -> vector<32x8xf32>
    %cst_16 = arith.constant dense<0xFF800000> : vector<32xf32>
    %49 = vector.multi_reduction <maximumf>, %48, %cst_16 [1] : vector<32x8xf32> to vector<32xf32>
    %50 = vector.shape_cast %49 : vector<32xf32> to vector<32x1xf32>
    %51 = vector.broadcast %50 : vector<32x1xf32> to vector<32x8xf32>
    %52 = arith.subf %48, %51 : vector<32x8xf32>
    %53 = math.exp %52 : vector<32x8xf32>
    %cst_17 = arith.constant dense<0.000000e+00> : vector<32xf32>
    %54 = vector.multi_reduction <add>, %53, %cst_17 [1] : vector<32x8xf32> to vector<32xf32>
    %55 = vector.shape_cast %54 : vector<32xf32> to vector<32x1xf32>
    %56 = tpu.reciprocal %55 {approx = true} : vector<32x1xf32> -> vector<32x1xf32>
    %57 = vector.broadcast %56 : vector<32x1xf32> to vector<32x8xf32>
    %58 = arith.mulf %53, %57 : vector<32x8xf32>
    %cst_18 = arith.constant dense<0.000000e+00> : vector<32x32xf32>
    %59 = tpu.matmul %58, %45, %cst_18 {dimension_numbers = #tpu.dot_dimension_numbers<[1], [0], [0], [1], [0, 0, 1, 1], [], []>} : vector<32x8xf32>, vector<8x32xf32>, vector<32x32xf32> -> vector<32x32xf32>
    %60 = arith.mulf %59, %20 : vector<32x32xf32>
    %cst_19 = arith.constant dense<0.000000e+00> : vector<8x32xf32>
    %61 = tpu.matmul %21, %60, %cst_19 {dimension_numbers = #tpu.dot_dimension_numbers<[1], [0], [0], [1], [0, 0, 1, 1], [], []>} : vector<8x32xf32>, vector<32x32xf32>, vector<8x32xf32> -> vector<8x32xf32>
    %cst_20 = arith.constant dense<0.000000e+00> : vector<8x32xf32>
    %62 = tpu.matmul %61, %6, %cst_20 {dimension_numbers = #tpu.dot_dimension_numbers<[1], [0], [0], [1], [0, 0, 1, 1], [], []>} : vector<8x32xf32>, vector<32x32xf32>, vector<8x32xf32> -> vector<8x32xf32>
    %63 = vector.broadcast %13 : vector<1x32xf32> to vector<8x32xf32>
    %64 = arith.addf %62, %63 : vector<8x32xf32>
    %65 = arith.addf %0, %64 : vector<8x32xf32>
    %cst_21 = arith.constant dense<0.000000e+00> : vector<8xf32>
    %66 = vector.multi_reduction <add>, %65, %cst_21 [1] : vector<8x32xf32> to vector<8xf32>
    %67 = vector.shape_cast %66 : vector<8xf32> to vector<8x1xf32>
    %cst_22 = arith.constant 3.200000e+01 : f32
    %68 = vector.broadcast %cst_22 : f32 to vector<8x1xf32>
    %69 = arith.divf %67, %68 : vector<8x1xf32>
    %70 = vector.broadcast %69 : vector<8x1xf32> to vector<8x32xf32>
    %71 = arith.subf %65, %70 : vector<8x32xf32>
    %72 = arith.mulf %71, %71 : vector<8x32xf32>
    %cst_23 = arith.constant dense<0.000000e+00> : vector<8xf32>
    %73 = vector.multi_reduction <add>, %72, %cst_23 [1] : vector<8x32xf32> to vector<8xf32>
    %74 = vector.shape_cast %73 : vector<8xf32> to vector<8x1xf32>
    %cst_24 = arith.constant 3.200000e+01 : f32
    %75 = vector.broadcast %cst_24 : f32 to vector<8x1xf32>
    %76 = arith.divf %74, %75 : vector<8x1xf32>
    %cst_25 = arith.constant 9.99999974E-6 : f32
    %77 = vector.broadcast %cst_25 : f32 to vector<8x1xf32>
    %78 = arith.addf %76, %77 : vector<8x1xf32>
    %79 = math.rsqrt %78 : vector<8x1xf32>
    %80 = vector.broadcast %79 : vector<8x1xf32> to vector<8x32xf32>
    %81 = arith.mulf %71, %80 : vector<8x32xf32>
    %cst_26 = arith.constant dense<0.000000e+00> : vector<8x32xf32>
    %82 = tpu.matmul %81, %7, %cst_26 {dimension_numbers = #tpu.dot_dimension_numbers<[1], [0], [0], [1], [0, 0, 1, 1], [], []>} : vector<8x32xf32>, vector<32x32xf32>, vector<8x32xf32> -> vector<8x32xf32>
    %83 = vector.broadcast %14 : vector<1x32xf32> to vector<8x32xf32>
    %84 = arith.addf %82, %83 : vector<8x32xf32>
    %cst_27 = arith.constant dense<0.000000e+00> : vector<64x64xf32>
    %85 = tpu.matmul %1, %8, %cst_27 {dimension_numbers = #tpu.dot_dimension_numbers<[1], [0], [0], [1], [0, 0, 1, 1], [], []>} : vector<64x32xf32>, vector<32x64xf32>, vector<64x64xf32> -> vector<64x64xf32>
    %86 = vector.broadcast %15 : vector<1x64xf32> to vector<64x64xf32>
    %87 = arith.addf %85, %86 : vector<64x64xf32>
    %88 = vector.extract_strided_slice %87 {offsets = [0, 0], sizes = [64, 32], strides = [1, 1]} : vector<64x64xf32> to vector<64x32xf32>
    %89 = vector.extract_strided_slice %87 {offsets = [0, 32], sizes = [64, 32], strides = [1, 1]} : vector<64x64xf32> to vector<64x32xf32>
    %cst_28 = arith.constant dense<0.000000e+00> : vector<32x32xf32>
    %90 = tpu.matmul %19, %84, %cst_28 {dimension_numbers = #tpu.dot_dimension_numbers<[1], [0], [0], [1], [0, 0, 1, 1], [], []>} : vector<32x8xf32>, vector<8x32xf32>, vector<32x32xf32> -> vector<32x32xf32>
    %91 = arith.mulf %90, %20 : vector<32x32xf32>
    %cst_29 = arith.constant dense<0.000000e+00> : vector<32x64xf32>
    %92 = tpu.matmul %91, %88, %cst_29 {dimension_numbers = #tpu.dot_dimension_numbers<[1], [1], [0], [0], [0, 0, 1, 0], [], []>} : vector<32x32xf32>, vector<64x32xf32>, vector<32x64xf32> -> vector<32x64xf32>
    %93 = arith.addf %92, %23 : vector<32x64xf32>
    %cst_30 = arith.constant dense<0xFF800000> : vector<32xf32>
    %94 = vector.multi_reduction <maximumf>, %93, %cst_30 [1] : vector<32x64xf32> to vector<32xf32>
    %95 = vector.shape_cast %94 : vector<32xf32> to vector<32x1xf32>
    %96 = vector.broadcast %95 : vector<32x1xf32> to vector<32x64xf32>
    %97 = arith.subf %93, %96 : vector<32x64xf32>
    %98 = math.exp %97 : vector<32x64xf32>
    %cst_31 = arith.constant dense<0.000000e+00> : vector<32xf32>
    %99 = vector.multi_reduction <add>, %98, %cst_31 [1] : vector<32x64xf32> to vector<32xf32>
    %100 = vector.shape_cast %99 : vector<32xf32> to vector<32x1xf32>
    %101 = vector.broadcast %100 : vector<32x1xf32> to vector<32x64xf32>
    %102 = arith.divf %98, %101 : vector<32x64xf32>
    %cst_32 = arith.constant dense<0.000000e+00> : vector<8x64xf32>
    %103 = tpu.matmul %21, %102, %cst_32 {dimension_numbers = #tpu.dot_dimension_numbers<[1], [0], [0], [1], [0, 0, 1, 1], [], []>} : vector<8x32xf32>, vector<32x64xf32>, vector<8x64xf32> -> vector<8x64xf32>
    %cst_33 = arith.constant dense<0.000000e+00> : vector<8x8xf32>
    %104 = tpu.matmul %103, %22, %cst_33 {dimension_numbers = #tpu.dot_dimension_numbers<[1], [1], [0], [0], [0, 0, 1, 0], [], []>} : vector<8x64xf32>, vector<8x64xf32>, vector<8x8xf32> -> vector<8x8xf32>
    %c0_34 = arith.constant 0 : index
    %c0_35 = arith.constant 0 : index
    %105 = vector.load %arg6[%c0_34, %c0_35] : memref<8x8xf32, #tpu.memory_space<vmem>>, vector<8x8xf32>
    tpu.vector_store %arg6[%c0_34, %c0_35], %104 {strides = array<i32>} : memref<8x8xf32, #tpu.memory_space<vmem>>, vector<8x8xf32>,
    %cst_36 = arith.constant dense<0.000000e+00> : vector<32x32xf32>
    %106 = tpu.matmul %102, %89, %cst_36 {dimension_numbers = #tpu.dot_dimension_numbers<[1], [0], [0], [1], [0, 0, 1, 1], [], []>} : vector<32x64xf32>, vector<64x32xf32>, vector<32x32xf32> -> vector<32x32xf32>
    %107 = arith.mulf %106, %20 : vector<32x32xf32>
    %cst_37 = arith.constant dense<0.000000e+00> : vector<8x32xf32>
    %108 = tpu.matmul %21, %107, %cst_37 {dimension_numbers = #tpu.dot_dimension_numbers<[1], [0], [0], [1], [0, 0, 1, 1], [], []>} : vector<8x32xf32>, vector<32x32xf32>, vector<8x32xf32> -> vector<8x32xf32>
    %cst_38 = arith.constant dense<0.000000e+00> : vector<8x32xf32>
    %109 = tpu.matmul %108, %9, %cst_38 {dimension_numbers = #tpu.dot_dimension_numbers<[1], [0], [0], [1], [0, 0, 1, 1], [], []>} : vector<8x32xf32>, vector<32x32xf32>, vector<8x32xf32> -> vector<8x32xf32>
    %110 = vector.broadcast %16 : vector<1x32xf32> to vector<8x32xf32>
    %111 = arith.addf %109, %110 : vector<8x32xf32>
    %112 = arith.addf %65, %111 : vector<8x32xf32>
    %cst_39 = arith.constant dense<0.000000e+00> : vector<8xf32>
    %113 = vector.multi_reduction <add>, %112, %cst_39 [1] : vector<8x32xf32> to vector<8xf32>
    %114 = vector.shape_cast %113 : vector<8xf32> to vector<8x1xf32>
    %cst_40 = arith.constant 3.200000e+01 : f32
    %115 = vector.broadcast %cst_40 : f32 to vector<8x1xf32>
    %116 = arith.divf %114, %115 : vector<8x1xf32>
    %117 = vector.broadcast %116 : vector<8x1xf32> to vector<8x32xf32>
    %118 = arith.subf %112, %117 : vector<8x32xf32>
    %119 = arith.mulf %118, %118 : vector<8x32xf32>
    %cst_41 = arith.constant dense<0.000000e+00> : vector<8xf32>
    %120 = vector.multi_reduction <add>, %119, %cst_41 [1] : vector<8x32xf32> to vector<8xf32>
    %121 = vector.shape_cast %120 : vector<8xf32> to vector<8x1xf32>
    %cst_42 = arith.constant 3.200000e+01 : f32
    %122 = vector.broadcast %cst_42 : f32 to vector<8x1xf32>
    %123 = arith.divf %121, %122 : vector<8x1xf32>
    %cst_43 = arith.constant 9.99999974E-6 : f32
    %124 = vector.broadcast %cst_43 : f32 to vector<8x1xf32>
    %125 = arith.addf %123, %124 : vector<8x1xf32>
    %126 = math.rsqrt %125 : vector<8x1xf32>
    %127 = vector.broadcast %126 : vector<8x1xf32> to vector<8x32xf32>
    %128 = arith.mulf %118, %127 : vector<8x32xf32>
    %cst_44 = arith.constant dense<0.000000e+00> : vector<8x128xf32>
    %129 = tpu.matmul %128, %10, %cst_44 {dimension_numbers = #tpu.dot_dimension_numbers<[1], [0], [0], [1], [0, 0, 1, 1], [], []>} : vector<8x32xf32>, vector<32x128xf32>, vector<8x128xf32> -> vector<8x128xf32>
    %130 = vector.broadcast %17 : vector<1x128xf32> to vector<8x128xf32>
    %131 = arith.addf %129, %130 : vector<8x128xf32>
    %cst_45 = arith.constant 0.000000e+00 : f32
    %132 = vector.broadcast %cst_45 : f32 to vector<8x128xf32>
    %133 = arith.maximumf %131, %132 : vector<8x128xf32>
    %cst_46 = arith.constant dense<0.000000e+00> : vector<8x32xf32>
    %134 = tpu.matmul %133, %11, %cst_46 {dimension_numbers = #tpu.dot_dimension_numbers<[1], [1], [0], [0], [0, 0, 1, 0], [], []>} : vector<8x128xf32>, vector<32x128xf32>, vector<8x32xf32> -> vector<8x32xf32>
    %135 = vector.broadcast %18 : vector<1x32xf32> to vector<8x32xf32>
    %136 = arith.addf %134, %135 : vector<8x32xf32>
    %137 = arith.addf %112, %136 : vector<8x32xf32>
    %c0_47 = arith.constant 0 : index
    %c0_48 = arith.constant 0 : index
    %138 = vector.load %arg5[%c0_47, %c0_48] : memref<8x32xf32, #tpu.memory_space<vmem>>, vector<8x32xf32>
    tpu.vector_store %arg5[%c0_47, %c0_48], %137 {strides = array<i32>} : memref<8x32xf32, #tpu.memory_space<vmem>>, vector<8x32xf32>,
    return
  }
}

</mosaic_0001>

<bundles_post_ra>
// kernel: decoder_block.1
= control target key start
LH: loop header
LB: loop body
LE: loop exit
PB: predicated region body
PF: predicated region fallthrough
CT: control target
= control target key end

     0   :  { %12 = vsyncpa [#allocation3], 0  ;;  %s2751_s0 = inlined_call_operand.vmem [shape: f32[8,32], index: 0, kind: input, shape index: {}]   ;;  %s2752_s1 = inlined_call_operand.hbm [shape: f32[64,32], index: 1, kind: input, shape index: {}]   ;;  %s2753_s2 = inlined_call_operand.vmem [shape: f32[32,512], index: 2, kind: input, shape index: {}]   ;;  %s2754_s3 = inlined_call_operand.vmem [shape: f32[8,128], index: 3, kind: input, shape index: {}]   ;;  %s2755_s4 = inlined_call_operand.vmem [shape: f32[112,64], index: 4, kind: input, shape index: {}]   ;;  %s2756_s5 = inlined_call_operand.hbm [shape: f32[8,32], index: 5, kind: output, shape index: {0}]   ;;  %s2757_s6 = inlined_call_operand.hbm [shape: f32[8,8], index: 6, kind: output, shape index: {1}]  }
   0x1   :  { %13 = vsyncpa [#allocation4], 0 }
   0x2   :  { %14 = vsyncpa [#allocation7], 0  ;;  %s2279_s21 = smov [#allocation2]  }
   0x3   :  { %s22_s22 = sshll.u32 %s2279_s21, 4  ;;  %s23_s22 = int_to_ptr.vmem [resolvable:$true] %s22_s22 }
   0x4   :  { %s2221_s23 = scalar_lea.vmem %s23_s22, 1024  ;;  %p2226_p1 = scmp.lt.s32.totalorder %s23_s22, %s23_s22 }
   0x5   :  { %p2222_p0 = scmp.ne.s32.totalorder %s23_s22, %s2221_s23  ;;  %p2227_p2 = scmp.lt.s32.totalorder %s2221_s23, %s2221_s23 }
   0x7   :  { %p2228_p3 = por %p2227_p2, %p2226_p1 }
   0x9   :  { %p2229_p4 = pnand %p2228_p3, %p2222_p0 }
   0xb   :  { %2232 = shalt.err (!%p2229_p4)
}
   0xc   :  { %s2280_s24 = smov 128   ;;  %s2281_s25 = smov 8  }
   0xd   :  { %28 = dma.hbm_to_vmem [thread:$0]  %s2752_s1, 1024, %s23_s22, [#allocation3], %s2280_s24, %s2280_s24, %s2281_s25  }
   0xe   :  { %2273 = dma.done.wait [#allocation3], 1024  }
   0xf   :  { %2274 = vsyncadd [#allocation3], 4294966272  ;;  %vm78_vm0 = vcmask 261120   ;;  %v2330_v0 = vld [vmem:[%s2751_s0] sm:$0xff]  ;;  %v2282_v8 = vmov 0.0   ;;  %vm2283_vm1 = vmmov 0   ;;  %v93_v18 = vlaneseq }
  0x10   :  { %v79_v1 = vsel %vm78_vm0, %v2330_v0, 0.0  ;;  %v2339_v7 = vld [vmem:[%s2753_s2 + $0x60] sm:$0xff]  ;;  %1965 = vmatprep.subr.mxu0 %v2282_v8  ;;  %1973 = vmatprep.mubr.msk.f32.mxu0 %vm2283_vm1, %v2282_v8  ;;  %vm170_vm2 = vcmask 64512   ;;  %v2391_v26 = vld [vmem:[%s2755_s4 + $0x8] sm:$0xff]  ;;  %s2284_s18 = smov 96   ;;  %v2399_v27 = vld [vmem:[%s2755_s4 + $0x10] sm:$0xff] }
  0x11   :  { %80 = vadd.xlane.f32.xlu0 %v79_v1  ;;  %v2345_v9 = vld [vmem:[%s2753_s2 + $0x40] sm:$0xff]  ;;  %1966 = vmatpush3.msra.mxu0 %v2339_v7  ;;  %v2377_v19 = vshrl.u32 %v93_v18, 7  ;;  %v2409_v28 = vld [vmem:[%s2755_s4 + $0x18] sm:$0xff]  ;;  %v2423_v32 = vld [vmem:[%s2755_s4 + $0x28] sm:$0xff]  ;;  %s2285_s1 = smov 64   ;;  %s2286_s30 = smov 32  }
  0x12   :  { %1967 = vmatprep.subr.mxu0 %v2282_v8  ;;  %v2354_v10 = vld [vmem:[%s2753_s2 + $0x20] sm:$0xff]  ;;  %v2430_v37 = vld [vmem:[%s2755_s4 + $0x30] sm:$0xff]  ;;  %v2435_v38 = vld [vmem:[%s2755_s4 + $0x38] sm:$0xff]  ;;  %vm1138_vm3 = vcmask 523264   ;;  %s2287_s14 = smov [#allocation6]  }
  0x13   :  { %1968 = vmatpush3.msra.mxu0 %v2345_v9  ;;  %v2361_v11 = vld [vmem:[%s2753_s2] sm:$0xff]  ;;  %v95_v20 = vsub.s32 0, %v2377_v19  ;;  %s1798_s15 = sshll.u32 %s2287_s14, 4  ;;  %s1799_s15 = int_to_ptr.vmem [resolvable:$true] %s1798_s15 }
  0x14   :  { %1969 = vmatprep.subr.mxu0 %v2282_v8  ;;  %v2373_v17 = vld [vmem:[%s2755_s4] sm:$0xff]  ;;  %s2233_s16 = scalar_lea.vmem %s1799_s15, 128  ;;  %p2238_p6 = scmp.lt.s32.totalorder %s1799_s15, %s1799_s15 }
  0x15   :  { %1970 = vmatpush3.msra.mxu0 %v2354_v10  ;;  %1978 = vmatprep.mubr.msk.f32.mxu1 %vm170_vm2, %v2373_v17  ;;  %v2383_v21 = vld [vmem:[%s2754_s3] sm:$0xff]  ;;  %p2234_p5 = scmp.ne.s32.totalorder %s1799_s15, %s2233_s16  ;;  %p2239_p7 = scmp.lt.s32.totalorder %s2233_s16, %s2233_s16 }
  0x16   :  { %1971 = vmatprep.subr.mxu0 %v2282_v8  ;;  %v96_v22 = vrot.slane %v2383_v21, %v95_v20  ;;  %v2418_v31 = vld [vmem:[%s2755_s4 + $0x20] sm:$0xff] }
  0x17   :  { %1972 = vmatpush3.msra.mxu0 %v2361_v11  ;;  %p2240_p8 = por %p2239_p7, %p2238_p6 }
  0x18   :  { %2011 = vmatprep.subr.mxu0 %v2282_v8 }
  0x19   :  { %p2241_p9 = pnand %p2240_p8, %p2234_p5 }
  0x9a   :  { %v81_v2 = vpop.xlane.xlu0 %80 }
  0x9b   :  { %v83_v3 = vmul.f32 0.03125, %v81_v2 }
  0x9d   :  { %v84_v4 = vsub.f32 %v2330_v0, %v83_v3 }
  0x9f   :  { %v85_v5 = vmul.f32 %v84_v4, %v84_v4 }
  0xa1   :  { %v86_v6 = vsel %vm78_vm0, %v85_v5, 0.0 }
  0xa2   :  { %87 = vadd.xlane.f32.xlu0 %v86_v6 }
 0x12b   :  { %v88_v12 = vpop.xlane.xlu0 %87 }
 0x12c   :  { %v89_v13 = vmul.f32 0.03125, %v88_v12 }
 0x12e   :  { %v90_v14 = vadd.f32 1e-05, %v89_v13 }
 0x130   :  { %2175 = vrsqrt.f32 %v90_v14 }
 0x13d   :  { %v2176_v15 = vpop.eup %2175 }
 0x13e   :  { %v92_v16 = vmul.f32 %v2176_v15, %v84_v4 }
 0x140   :  { %1974 = vmatmul.mubr.msk.f32.vlgmr.msra.gmra.mxu0 %vm78_vm0, %v92_v16 }
 0x141   :  { %2019 = vmatprep.mubr.msk.f32.mxu0 %vm2283_vm1, %v2282_v8 }
 0x200   :  { %v166_v23 = vpop.f32.mrf.mxu0 }
 0x201   :  { %v2386_v24 = vadd.f32 %v166_v23, %v96_v22 }
 0x202   :  { %v1975_v25 = vpop.f32.mrf.mxu0 }
 0x203   :  { %273 = vrot.lane.b32.xlu1 %v2386_v24, %s2284_s18  ;;  %1976 = vmatprep.subr.mxu1 %v2386_v24 }
 0x204   :  { %1977 = vmatpush3.msra.mxu1 %v2386_v24 }
 0x205   :  { %1979 = vmatmul.mubr.msk.f32.vlgmr.msra.gmra.mxu1 %vm170_vm2, %v2391_v26 }
 0x206   :  { %1981 = vmatprep.mubr.msk.f32.mxu1 %vm170_vm2, %v2399_v27 }
 0x209   :  { %1982 = vmatmul.mubr.msk.f32.gmra.mxu1 %vm170_vm2, %v2409_v28 }
 0x275   :  { %v274_v29 = vpop.permute.xlu1 %273 }
 0x276   :  { %1984 = vmatprep.subr.msk.mxu1 %vm78_vm0, %v274_v29 }
 0x277   :  { %1985 = vmatpush3.xpose.msk.msra.mxu1 %vm78_vm0, %v274_v29 }
 0x2c5   :  { %v1980_v30 = vpop.f32.mrf.mxu1 }
 0x2c6   :  { %v269_v35 = vmul.f32 %v1980_v30, %v2423_v32 }
 0x2c7   :  { %v249_v33 = vpop.f32.mrf.mxu1 }
 0x2c8   :  { %v268_v34 = vmul.f32 %v249_v33, %v2418_v31 }
 0x2c9   :  { %v1983_v36 = vpop.f32.mrf.mxu1 }
 0x2ca   :  { %1986 = vmatprep.mubr.msk.f32.mxu1 %vm78_vm0, %v268_v34  ;;  %v271_v41 = vmul.f32 %v1983_v36, %v2435_v38 }
 0x2cb   :  { %v259_v39 = vpop.f32.mrf.mxu1  ;;  %1987 = vmatmul.mubr.msk.f32.vlgmr.msra.gmra.mxu1 %vm78_vm0, %v269_v35 }
 0x2cc   :  { %v270_v40 = vmul.f32 %v259_v39, %v2430_v37 }
 0x2ce   :  { %1989 = vmatprep.mubr.msk.f32.mxu1 %vm78_vm0, %v270_v40 }
 0x2cf   :  { %1990 = vmatmul.mubr.msk.f32.gmra.mxu1 %vm78_vm0, %v271_v41 }
 0x38b   :  { %v1988_v42 = vpop.f32.mrf.mxu1 }
 0x38c   :  { %v377_v43 = vsel %vm170_vm2, %v1988_v42, -inf }
 0x38d   :  { %378 = vmax.xlane.f32.xlu0 %v377_v43  ;;  %v355_v44 = vpop.f32.mrf.mxu1  ;;  %v2479_v43 = vld [vmem:[%s2755_s4 + $0x40] sm:$0xff] }
 0x38e   :  { %v374_v45 = vsel %vm170_vm2, %v355_v44, -inf }
 0x38f   :  { %375 = vmax.xlane.f32.xlu1 %v374_v45  ;;  %v1991_v46 = vpop.f32.mrf.mxu1 }
 0x390   :  { %v383_v49 = vsel %vm170_vm2, %v1991_v46, -inf }
 0x391   :  { %v365_v47 = vpop.f32.mrf.mxu1 }
 0x392   :  { %v380_v48 = vsel %vm170_vm2, %v365_v47, -inf }
 0x393   :  { %381 = vmax.xlane.f32.xlu0 %v380_v48 }
 0x397   :  { %384 = vmax.xlane.f32.xlu0 %v383_v49 }
 0x3a0   :  { %609 = vrot.lane.b32.xlu1 %v2339_v7, %s2286_s30 }
 0x3a4   :  { %607 = vrot.lane.b32.xlu1 %v2345_v9, %s2286_s30 }
 0x3a8   :  { %603 = vrot.lane.b32.xlu1 %v2361_v11, %s2286_s30 }
 0x416   :  { %v379_v50 = vpop.xlane.xlu0 %378 }
 0x417   :  { %v387_v51 = vsub.f32 %v1988_v42, %v379_v50 }
 0x418   :  { %v376_v52 = vpop.xlane.xlu1 %375 }
 0x419   :  { %v392_v53 = vmul.f32 1.442695, %v387_v51  ;;  %v386_v54 = vsub.f32 %v355_v44, %v376_v52 }
 0x41b   :  { %2177 = vpow2.f32 %v392_v53  ;;  %v390_v55 = vmul.f32 1.442695, %v386_v54 }
 0x41c   :  { %v382_v56 = vpop.xlane.xlu0 %381  ;;  %v610_v34 = vpop.permute.xlu1 %609 }
 0x41d   :  { %2179 = vpow2.f32 %v390_v55  ;;  %v388_v57 = vsub.f32 %v365_v47, %v382_v56  ;;  %2012 = vmatpush3.msra.mxu0 %v610_v34 }
 0x41e   :  { %2013 = vmatprep.subr.mxu0 %v2282_v8 }
 0x41f   :  { %v394_v60 = vmul.f32 1.442695, %v388_v57 }
 0x420   :  { %v385_v58 = vpop.xlane.xlu0 %384  ;;  %v608_v40 = vpop.permute.xlu1 %607 }
 0x421   :  { %v389_v59 = vsub.f32 %v1991_v46, %v385_v58  ;;  %2014 = vmatpush3.msra.mxu0 %v608_v40  ;;  %v597_v46 = vsub.s32 1, %v2377_v19  ;;  %v2500_v58 = vld [vmem:[%s2753_s2 + $0x68] sm:$0xff] }
 0x422   :  { %2015 = vmatprep.subr.mxu0 %v2282_v8 }
 0x423   :  { %v396_v61 = vmul.f32 1.442695, %v389_v59  ;;  %v598_v47 = vrot.slane %v2383_v21, %v597_v46  ;;  %v2514_v59 = vld [vmem:[%s2753_s2 + $0x28] sm:$0xff] }
 0x424   :  { %v604_v11 = vpop.permute.xlu1 %603 }
 0x425   :  { %2181 = vpow2.f32 %v396_v61  ;;  %v39_v61 = vld [vmem:[#allocation2] sm:$0xff] }
 0x426   :  { %2183 = vpow2.f32 %v394_v60  ;;  %v2523_v60 = vld [vmem:[%s2753_s2 + $0x8] sm:$0xff] }
 0x428   :  { %v2178_v62 = vpop.eup %2177 }
 0x429   :  { %v401_v63 = vsel %vm170_vm2, %v2178_v62, 0.0 }
 0x42a   :  { %v2180_v1 = vpop.eup %2179  ;;  %402 = vadd.xlane.f32.xlu0 %v401_v63 }
 0x42b   :  { %v398_v2 = vsel %vm170_vm2, %v2180_v1, 0.0 }
 0x42e   :  { %399 = vadd.xlane.f32.xlu0 %v398_v2 }
 0x432   :  { %v2182_v3 = vpop.eup %2181 }
 0x433   :  { %v407_v4 = vsel %vm170_vm2, %v2182_v3, 0.0  ;;  %v2184_v5 = vpop.eup %2183 }
 0x434   :  { %408 = vadd.xlane.f32.xlu0 %v407_v4  ;;  %v404_v6 = vsel %vm170_vm2, %v2184_v5, 0.0 }
 0x438   :  { %405 = vadd.xlane.f32.xlu0 %v404_v6  ;;  %v40_v6 = vld [vmem:[#allocation2 + $0x8] sm:$0xff] }
 0x44e   :  { %418 = vrot.lane.b32.xlu0 %v2386_v24, %s2285_s1 }
 0x452   :  { %605 = vrot.lane.b32.xlu0 %v2354_v10, %s2286_s30 }
 0x4b3   :  { %v403_v12 = vpop.xlane.xlu0 %402 }
 0x4b4   :  { %2185 = vrcp.f32 %v403_v12  ;;  %v41_v12 = vld [vmem:[#allocation2 + $0x10] sm:$0xff] }
 0x4b7   :  { %v400_v13 = vpop.xlane.xlu0 %399 }
 0x4b8   :  { %2187 = vrcp.f32 %v400_v13  ;;  %v42_v13 = vld [vmem:[#allocation2 + $0x18] sm:$0xff] }
 0x4bd   :  { %v409_v14 = vpop.xlane.xlu0 %408 }
 0x4be   :  { %2189 = vrcp.f32 %v409_v14  ;;  %v43_v14 = vld [vmem:[#allocation2 + $0x20] sm:$0xff] }
 0x4c1   :  { %v406_v15 = vpop.xlane.xlu0 %405  ;;  %v2186_v16 = vpop.eup %2185 }
 0x4c2   :  { %2191 = vrcp.f32 %v406_v15  ;;  %v415_v23 = vmul.f32 %v2186_v16, %v2178_v62  ;;  %v44_v15 = vld [vmem:[#allocation2 + $0x28] sm:$0xff]  ;;  %v45_v16 = vld [vmem:[#allocation2 + $0x30] sm:$0xff] }
 0x4c5   :  { %v2188_v18 = vpop.eup %2187  ;;  %v419_v20 = vpop.permute.xlu0 %418 }
 0x4c6   :  { %1992 = vmatprep.subr.mxu1 %v419_v20  ;;  %v414_v22 = vmul.f32 %v2188_v18, %v2180_v1 }
 0x4c7   :  { %1993 = vmatpush3.msra.mxu1 %v419_v20 }
 0x4c8   :  { %1994 = vmatprep.mubr.msk.f32.mxu1 %vm170_vm2, %v414_v22  ;;  %2000 = vmatprep.subr.mxu1 %v2282_v8  ;;  %v46_v22 = vld [vmem:[#allocation2 + $0x38] sm:$0xff] }
 0x4c9   :  { %1995 = vmatmul.mubr.msk.f32.vlgmr.msra.gmra.mxu1 %vm170_vm2, %v415_v23  ;;  %v606_v7 = vpop.permute.xlu0 %605 }
 0x4ca   :  { %2016 = vmatpush3.msra.mxu0 %v606_v7 }
 0x4cb   :  { %v2190_v24 = vpop.eup %2189  ;;  %2017 = vmatprep.subr.mxu0 %v2282_v8 }
 0x4cc   :  { %v417_v30 = vmul.f32 %v2190_v24, %v2182_v3  ;;  %2018 = vmatpush3.msra.mxu0 %v604_v11 }
 0x4cf   :  { %v2192_v25 = vpop.eup %2191 }
 0x4d0   :  { %v416_v29 = vmul.f32 %v2192_v25, %v2184_v5  ;;  %v704_v25 = vsub.s32 2, %v2377_v19 }
 0x4d2   :  { %1997 = vmatprep.mubr.msk.f32.mxu1 %vm170_vm2, %v416_v29  ;;  %v705_v34 = vrot.slane %v2383_v21, %v704_v25 }
 0x4d3   :  { %1998 = vmatmul.mubr.msk.f32.gmra.mxu1 %vm170_vm2, %v417_v30  ;;  %v781_v30 = vsub.s32 3, %v2377_v19 }
 0x4d4   :  { %2008 = vmatprep.mubr.msk.f32.mxu1 %vm2283_vm1, %v2282_v8 }
 0x589   :  { %v1996_v33 = vpop.f32.mrf.mxu1 }
 0x58a   :  { %v519_v9 = vmul.f32 %v1996_v33, %v2423_v32 }
 0x58b   :  { %v499_v35 = vpop.f32.mrf.mxu1 }
 0x58c   :  { %v518_v42 = vmul.f32 %v499_v35, %v2418_v31 }
 0x593   :  { %v1999_v36 = vpop.f32.mrf.mxu1 }
 0x594   :  { %v521_v39 = vmul.f32 %v1999_v36, %v2435_v38  ;;  %v782_v36 = vrot.slane %v2383_v21, %v781_v30 }
 0x595   :  { %v509_v41 = vpop.f32.mrf.mxu1 }
 0x596   :  { %v520_v10 = vmul.f32 %v509_v41, %v2430_v37  ;;  %2001 = vmatpush3.msra.mxu1 %v521_v39 }
 0x597   :  { %2002 = vmatprep.subr.mxu1 %v2282_v8 }
 0x598   :  { %2003 = vmatpush3.msra.mxu1 %v520_v10 }
 0x599   :  { %2004 = vmatprep.subr.mxu1 %v2282_v8 }
 0x59a   :  { %2005 = vmatpush3.msra.mxu1 %v519_v9 }
 0x59b   :  { %2006 = vmatprep.subr.mxu1 %v2282_v8 }
 0x59c   :  { %2007 = vmatpush3.msra.mxu1 %v518_v42 }
 0x59d   :  { %2009 = vmatmul.mubr.msk.f32.vlgmr.msra.gmra.mxu1 %vm78_vm0, %v2479_v43  ;;  %2022 = vmatprep.subr.mxu1 %v2282_v8 }
 0x59e   :  { %2030 = vmatprep.mubr.msk.f32.mxu1 %vm2283_vm1, %v2282_v8  ;;  %2023 = vmatpush3.msra.mxu1 %v2500_v58 }
 0x59f   :  { %2024 = vmatprep.subr.mxu1 %v2282_v8 }
 0x65d   :  { %v591_v44 = vpop.f32.mrf.mxu1 }
 0x65e   :  { %2020 = vmatmul.mubr.msk.f32.vlgmr.msra.gmra.mxu0 %vm78_vm0, %v591_v44 }
 0x65f   :  { %v2010_v45 = vpop.f32.mrf.mxu1  ;;  %2041 = vmatprep.mubr.msk.f32.mxu0 %vm78_vm0, %v39_v61  ;;  %v75_v61 = vld [vmem:[%s2755_s4 + $0x58] sm:$0xff] }
 0x71e   :  { %v684_v48 = vpop.f32.mrf.mxu0 }
 0x71f   :  { %v685_v49 = vadd.f32 %v684_v48, %v598_v47 }
 0x720   :  { %v2021_v50 = vpop.f32.mrf.mxu0 }
 0x721   :  { %v2491_v51 = vadd.f32 %v685_v49, %v2330_v0  ;;  %v2505_v0 = vld [vmem:[%s2753_s2 + $0x48] sm:$0xff] }
 0x722   :  { %2025 = vmatpush3.msra.mxu1 %v2505_v0 }
 0x723   :  { %v689_v52 = vsel %vm78_vm0, %v2491_v51, 0.0  ;;  %2026 = vmatprep.subr.mxu1 %v2282_v8 }
 0x724   :  { %690 = vadd.xlane.f32.xlu0 %v689_v52  ;;  %2027 = vmatpush3.msra.mxu1 %v2514_v59 }
 0x725   :  { %2028 = vmatprep.subr.mxu1 %v2282_v8 }
 0x726   :  { %2029 = vmatpush3.msra.mxu1 %v2523_v60 }
 0x73a   :  { %793 = vrot.lane.b32.xlu0 %v2500_v58, %s2284_s18 }
 0x73e   :  { %789 = vrot.lane.b32.xlu0 %v2514_v59, %s2284_s18 }
 0x7ad   :  { %v691_v53 = vpop.xlane.xlu0 %690 }
 0x7ae   :  { %v692_v54 = vmul.f32 0.03125, %v691_v53 }
 0x7b0   :  { %v693_v55 = vsub.f32 %v2491_v51, %v692_v54 }
 0x7b1   :  { %v794_v62 = vpop.permute.xlu0 %793 }
 0x7b2   :  { %v694_v56 = vmul.f32 %v693_v55, %v693_v55  ;;  %2033 = vmatprep.subr.mxu0 %v794_v62 }
 0x7b3   :  { %2034 = vmatpush3.msra.mxu0 %v794_v62 }
 0x7b4   :  { %v695_v57 = vsel %vm78_vm0, %v694_v56, 0.0 }
 0x7b5   :  { %696 = vadd.xlane.f32.xlu1 %v695_v57  ;;  %v790_v4 = vpop.permute.xlu0 %789  ;;  %v77_v57 = vld [vmem:[%s2755_s4 + $0x68] sm:$0xff] }
 0x7c6   :  { %791 = vrot.lane.b32.xlu1 %v2505_v0, %s2284_s18 }
 0x7ca   :  { %787 = vrot.lane.b32.xlu1 %v2523_v60, %s2284_s18 }
 0x83e   :  { %v697_v63 = vpop.xlane.xlu1 %696 }
 0x83f   :  { %v698_v1 = vmul.f32 0.03125, %v697_v63  ;;  %v76_v63 = vld [vmem:[%s2755_s4 + $0x60] sm:$0xff] }
 0x841   :  { %v699_v2 = vadd.f32 1e-05, %v698_v1 }
 0x842   :  { %v792_v3 = vpop.permute.xlu1 %791 }
 0x843   :  { %2193 = vrsqrt.f32 %v699_v2  ;;  %2035 = vmatprep.subr.mxu0 %v792_v3 }
 0x844   :  { %2036 = vmatpush3.msra.mxu0 %v792_v3 }
 0x845   :  { %2037 = vmatprep.subr.mxu0 %v790_v4 }
 0x846   :  { %v788_v5 = vpop.permute.xlu1 %787  ;;  %2038 = vmatpush3.msra.mxu0 %v790_v4 }
 0x847   :  { %2039 = vmatprep.subr.mxu0 %v788_v5 }
 0x848   :  { %2040 = vmatpush3.msra.mxu0 %v788_v5 }
 0x849   :  { %2042 = vmatmul.mubr.msk.f32.vlgmr.msra.gmra.mxu0 %vm78_vm0, %v40_v6  ;;  %v74_v6 = vld [vmem:[%s2755_s4 + $0x50] sm:$0xff] }
 0x84a   :  { %2044 = vmatprep.mubr.msk.f32.mxu0 %vm78_vm0, %v41_v12 }
 0x84d   :  { %2045 = vmatmul.mubr.msk.f32.gmra.mxu0 %vm78_vm0, %v42_v13 }
 0x84e   :  { %2047 = vmatprep.mubr.msk.f32.mxu0 %vm78_vm0, %v43_v14 }
 0x850   :  { %v2194_v18 = vpop.eup %2193 }
 0x851   :  { %v701_v20 = vmul.f32 %v2194_v18, %v693_v55  ;;  %2048 = vmatmul.mubr.msk.f32.gmra.mxu0 %vm78_vm0, %v44_v15 }
 0x852   :  { %2050 = vmatprep.mubr.msk.f32.mxu0 %vm78_vm0, %v45_v16 }
 0x853   :  { %2031 = vmatmul.mubr.msk.f32.vlgmr.msra.gmra.mxu1 %vm78_vm0, %v701_v20 }
 0x854   :  { %2055 = vmatprep.mubr.msk.f32.mxu1 %vm170_vm2, %v2373_v17 }
 0x855   :  { %2051 = vmatmul.mubr.msk.f32.gmra.mxu0 %vm78_vm0, %v46_v22 }
 0x909   :  { %v2043_v23 = vpop.f32.mrf.mxu0 }
 0x90a   :  { %v2588_v44 = vadd.f32 %v2043_v23, %v782_v36 }
 0x90b   :  { %v889_v24 = vpop.f32.mrf.mxu0 }
 0x90c   :  { %v2594_v45 = vadd.f32 %v889_v24, %v782_v36 }
 0x90d   :  { %v2046_v29 = vpop.f32.mrf.mxu0 }
 0x90f   :  { %v899_v33 = vpop.f32.mrf.mxu0 }
 0x911   :  { %v2049_v35 = vpop.f32.mrf.mxu0 }
 0x912   :  { %v2559_v42 = vadd.f32 %v2049_v35, %v782_v36 }
 0x913   :  { %v775_v39 = vpop.f32.mrf.mxu1  ;;  %v909_v40 = vpop.f32.mrf.mxu0 }
 0x914   :  { %v776_v7 = vadd.f32 %v775_v39, %v705_v34 }
 0x915   :  { %v2032_v41 = vpop.f32.mrf.mxu1  ;;  %v2052_v17 = vpop.f32.mrf.mxu0 }
 0x916   :  { %2053 = vmatprep.subr.mxu1 %v776_v7  ;;  %v2547_v10 = vadd.f32 %v2052_v17, %v782_v36 }
 0x917   :  { %2054 = vmatpush3.msra.mxu1 %v776_v7  ;;  %v919_v9 = vpop.f32.mrf.mxu0 }
 0x918   :  { %2056 = vmatmul.mubr.msk.f32.vlgmr.msra.gmra.mxu1 %vm170_vm2, %v2391_v26  ;;  %2061 = vmatprep.subr.msk.mxu0 %vm78_vm0, %v2547_v10  ;;  %v2553_v11 = vadd.f32 %v919_v9, %v782_v36  ;;  %v2570_v26 = vadd.f32 %v909_v40, %v782_v36 }
 0x919   :  { %2058 = vmatprep.mubr.msk.f32.mxu1 %vm170_vm2, %v2399_v27  ;;  %2062 = vmatpush3.xpose.msk.msra.mxu0 %vm78_vm0, %v2547_v10  ;;  %v2576_v27 = vadd.f32 %v2046_v29, %v782_v36 }
 0x91a   :  { %2063 = vmatprep.subr.msk.mxu0 %vm78_vm0, %v2553_v11  ;;  %2083 = vmatprep.subr.mxu1 %v2282_v8 }
 0x91c   :  { %2059 = vmatmul.mubr.msk.f32.gmra.mxu1 %vm170_vm2, %v2409_v28  ;;  %v2582_v28 = vadd.f32 %v899_v33, %v782_v36 }
 0x91d   :  { %2064 = vmatpush3.xpose.msk.msra.mxu0 %vm78_vm0, %v2553_v11  ;;  %2091 = vmatprep.mubr.msk.f32.mxu1 %vm2283_vm1, %v2282_v8 }
 0x91e   :  { %2065 = vmatprep.subr.msk.mxu0 %vm78_vm0, %v2559_v42 }
 0x921   :  { %2066 = vmatpush3.xpose.msk.msra.mxu0 %vm78_vm0, %v2559_v42 }
 0x922   :  { %2067 = vmatprep.subr.msk.mxu0 %vm78_vm0, %v2570_v26 }
 0x925   :  { %2068 = vmatpush3.xpose.msk.msra.mxu0 %vm78_vm0, %v2570_v26 }
 0x926   :  { %2069 = vmatprep.subr.msk.mxu0 %vm78_vm0, %v2576_v27 }
 0x929   :  { %2070 = vmatpush3.xpose.msk.msra.mxu0 %vm78_vm0, %v2576_v27 }
 0x92a   :  { %2071 = vmatprep.subr.msk.mxu0 %vm78_vm0, %v2582_v28 }
 0x92d   :  { %2072 = vmatpush3.xpose.msk.msra.mxu0 %vm78_vm0, %v2582_v28 }
 0x92e   :  { %2073 = vmatprep.subr.msk.mxu0 %vm78_vm0, %v2588_v44 }
 0x931   :  { %2074 = vmatpush3.xpose.msk.msra.mxu0 %vm78_vm0, %v2588_v44 }
 0x932   :  { %2075 = vmatprep.subr.msk.mxu0 %vm78_vm0, %v2594_v45 }
 0x935   :  { %2076 = vmatpush3.xpose.msk.msra.mxu0 %vm78_vm0, %v2594_v45 }
 0x936   :  { %2132 = vmatprep.subr.mxu0 %v2282_v8 }
 0x9d8   :  { %v2057_v46 = vpop.f32.mrf.mxu1 }
 0x9d9   :  { %v1014_v49 = vmul.f32 %v2057_v46, %v2423_v32 }
 0x9da   :  { %v994_v47 = vpop.f32.mrf.mxu1 }
 0x9db   :  { %v1013_v48 = vmul.f32 %v994_v47, %v2418_v31  ;;  %v73_v47 = vld [vmem:[%s2755_s4 + $0x48] sm:$0xff] }
 0x9dc   :  { %v2060_v50 = vpop.f32.mrf.mxu1 }
 0x9dd   :  { %2077 = vmatprep.mubr.msk.f32.mxu0 %vm78_vm0, %v1013_v48  ;;  %v1016_v54 = vmul.f32 %v2060_v50, %v2435_v38 }
 0x9de   :  { %v1004_v52 = vpop.f32.mrf.mxu1  ;;  %2078 = vmatmul.mubr.msk.f32.vlgmr.msra.gmra.mxu0 %vm78_vm0, %v1014_v49 }
 0x9df   :  { %v1015_v53 = vmul.f32 %v1004_v52, %v2430_v37 }
 0x9e1   :  { %2080 = vmatprep.mubr.msk.f32.mxu0 %vm78_vm0, %v1015_v53 }
 0x9e2   :  { %2081 = vmatmul.mubr.msk.f32.gmra.mxu0 %vm78_vm0, %v1016_v54 }
 0x9e3   :  { %2140 = vmatprep.mubr.msk.f32.mxu0 %vm2283_vm1, %v2282_v8 }
 0xa9e   :  { %v2079_v55 = vpop.f32.mrf.mxu0 }
 0xa9f   :  { %v1125_v3 = vadd.f32 %v2079_v55, %v75_v61 }
 0xaa0   :  { %v1119_v56 = vpop.f32.mrf.mxu0 }
 0xaa1   :  { %v1120_v13 = vadd.f32 %v1119_v56, %v74_v6  ;;  %v1142_v14 = vsel %vm1138_vm3, %v1125_v3, -inf }
 0xaa2   :  { %v2082_v62 = vpop.f32.mrf.mxu0 }
 0xaa3   :  { %v1135_v1 = vadd.f32 %v2082_v62, %v77_v57  ;;  %v1139_v15 = vsel %vm1138_vm3, %v1120_v13, -inf }
 0xaa4   :  { %v1129_v2 = vpop.f32.mrf.mxu0 }
 0xaa5   :  { %v1130_v4 = vadd.f32 %v1129_v2, %v76_v63  ;;  %v1148_v5 = vsel %vm1138_vm3, %v1135_v1, -inf }
 0xaa6   :  { %1149 = vmax.xlane.f32.xlu0 %v1148_v5 }
 0xaa7   :  { %v1145_v12 = vsel %vm1138_vm3, %v1130_v4, -inf }
 0xaa8   :  { %1146 = vmax.xlane.f32.xlu1 %v1145_v12 }
 0xaaa   :  { %1143 = vmax.xlane.f32.xlu0 %v1142_v14 }
 0xaae   :  { %1140 = vmax.xlane.f32.xlu0 %v1139_v15 }
 0xb2f   :  { %v1150_v16 = vpop.xlane.xlu0 %1149 }
 0xb30   :  { %v1154_v18 = vsub.f32 %v1135_v1, %v1150_v16 }
 0xb31   :  { %v1147_v20 = vpop.xlane.xlu1 %1146 }
 0xb32   :  { %v1161_v22 = vmul.f32 1.442695, %v1154_v18  ;;  %v1153_v23 = vsub.f32 %v1130_v4, %v1147_v20 }
 0xb33   :  { %v1144_v24 = vpop.xlane.xlu0 %1143 }
 0xb34   :  { %2195 = vpow2.f32 %v1161_v22  ;;  %v1159_v25 = vmul.f32 1.442695, %v1153_v23  ;;  %v1152_v29 = vsub.f32 %v1125_v3, %v1144_v24 }
 0xb36   :  { %2197 = vpow2.f32 %v1159_v25  ;;  %v1157_v30 = vmul.f32 1.442695, %v1152_v29 }
 0xb37   :  { %v1141_v33 = vpop.xlane.xlu0 %1140 }
 0xb38   :  { %2199 = vpow2.f32 %v1157_v30  ;;  %v1151_v34 = vsub.f32 %v1120_v13, %v1141_v33 }
 0xb3a   :  { %v1155_v35 = vmul.f32 1.442695, %v1151_v34 }
 0xb3c   :  { %2201 = vpow2.f32 %v1155_v35  ;;  %v61_v35 = vld [vmem:[%s2753_s2 + $0x70] sm:$0xff] }
 0xb41   :  { %v2196_v36 = vpop.eup %2195 }
 0xb42   :  { %v1172_v39 = vsel %vm1138_vm3, %v2196_v36, 0.0 }
 0xb43   :  { %v2198_v40 = vpop.eup %2197  ;;  %1173 = vadd.xlane.f32.xlu0 %v1172_v39  ;;  %v49_v39 = vld [vmem:[%s2753_s2 + $0x10] sm:$0xff] }
 0xb44   :  { %v1169_v7 = vsel %vm1138_vm3, %v2198_v40, 0.0 }
 0xb45   :  { %v2200_v41 = vpop.eup %2199  ;;  %1170 = vadd.xlane.f32.xlu1 %v1169_v7  ;;  %v58_v7 = vld [vmem:[%s2753_s2 + $0x58] sm:$0xff] }
 0xb46   :  { %v1166_v17 = vsel %vm1138_vm3, %v2200_v41, 0.0 }
 0xb47   :  { %1167 = vadd.xlane.f32.xlu0 %v1166_v17 }
 0xb49   :  { %v2202_v9 = vpop.eup %2201 }
 0xb4a   :  { %v1163_v46 = vsel %vm1138_vm3, %v2202_v9, 0.0 }
 0xb4b   :  { %1164 = vadd.xlane.f32.xlu1 %v1163_v46 }
 0xb5c   :  { %1342 = vrot.lane.b32.xlu1 %v2553_v11, %s2284_s18 }
 0xb5d   :  { %1344 = vrot.lane.b32.xlu0 %v2547_v10, %s2284_s18 }
 0xb60   :  { %1340 = vrot.lane.b32.xlu1 %v2559_v42, %s2284_s18 }
 0xb61   :  { %1336 = vrot.lane.b32.xlu0 %v2576_v27, %s2284_s18 }
 0xb64   :  { %1338 = vrot.lane.b32.xlu1 %v2570_v26, %s2284_s18 }
 0xb65   :  { %1332 = vrot.lane.b32.xlu0 %v2588_v44, %s2284_s18 }
 0xb68   :  { %1334 = vrot.lane.b32.xlu1 %v2582_v28, %s2284_s18 }
 0xb69   :  { %1535 = vrot.lane.b32.xlu0 %v2500_v58, %s2286_s30 }
 0xb6c   :  { %1330 = vrot.lane.b32.xlu1 %v2594_v45, %s2284_s18 }
 0xb6d   :  { %1531 = vrot.lane.b32.xlu0 %v2514_v59, %s2286_s30 }
 0xb70   :  { %1533 = vrot.lane.b32.xlu1 %v2505_v0, %s2286_s30 }
 0xb74   :  { %1529 = vrot.lane.b32.xlu1 %v2523_v60, %s2286_s30 }
 0xbcc   :  { %v1174_v10 = vpop.xlane.xlu0 %1173 }
 0xbcd   :  { %2203 = vrcp.f32 %v1174_v10 }
 0xbce   :  { %v1171_v11 = vpop.xlane.xlu1 %1170 }
 0xbcf   :  { %2205 = vrcp.f32 %v1171_v11 }
 0xbd0   :  { %v1168_v42 = vpop.xlane.xlu0 %1167 }
 0xbd1   :  { %2207 = vrcp.f32 %v1168_v42  ;;  %v50_v42 = vld [vmem:[%s2753_s2 + $0x18] sm:$0xff] }
 0xbd4   :  { %v1165_v26 = vpop.xlane.xlu1 %1164  ;;  %v1345_v48 = vpop.permute.xlu0 %1344 }
 0xbd5   :  { %2209 = vrcp.f32 %v1165_v26  ;;  %v1630_v26 = vsub.s32 5, %v2377_v19 }
 0xbd8   :  { %v1343_v49 = vpop.permute.xlu1 %1342  ;;  %v1337_v55 = vpop.permute.xlu0 %1336 }
 0xbda   :  { %v2204_v58 = vpop.eup %2203 }
 0xbdb   :  { %v1182_v27 = vmul.f32 %v2204_v58, %v2196_v36  ;;  %v53_v36 = vld [vmem:[%s2753_s2 + $0x30] sm:$0xff]  ;;  %v1631_v58 = vrot.slane %v2383_v21, %v1630_v26 }
 0xbdc   :  { %v2206_v28 = vpop.eup %2205  ;;  %v1341_v50 = vpop.permute.xlu1 %1340 }
 0xbdd   :  { %2084 = vmatpush3.msra.mxu1 %v1182_v27  ;;  %v1180_v44 = vmul.f32 %v2206_v28, %v2198_v40  ;;  %v1333_v57 = vpop.permute.xlu0 %1332  ;;  %v62_v40 = vld [vmem:[%s2753_s2 + $0x78] sm:$0xff] }
 0xbde   :  { %v2208_v59 = vpop.eup %2207  ;;  %2085 = vmatprep.subr.mxu1 %v2282_v8 }
 0xbdf   :  { %2086 = vmatpush3.msra.mxu1 %v1180_v44  ;;  %v1178_v0 = vmul.f32 %v2208_v59, %v2200_v41  ;;  %v54_v41 = vld [vmem:[%s2753_s2 + $0x38] sm:$0xff] }
 0xbe0   :  { %2087 = vmatprep.subr.mxu1 %v2282_v8  ;;  %v1339_v53 = vpop.permute.xlu1 %1338 }
 0xbe1   :  { %2088 = vmatpush3.msra.mxu1 %v1178_v0  ;;  %v1536_v62 = vpop.permute.xlu0 %1535 }
 0xbe2   :  { %v2210_v60 = vpop.eup %2209  ;;  %2089 = vmatprep.subr.mxu1 %v2282_v8  ;;  %2133 = vmatpush3.msra.mxu0 %v1536_v62 }
 0xbe3   :  { %v1176_v45 = vmul.f32 %v2210_v60, %v2202_v9  ;;  %2134 = vmatprep.subr.mxu0 %v2282_v8 }
 0xbe4   :  { %v1335_v56 = vpop.permute.xlu1 %1334 }
 0xbe5   :  { %2090 = vmatpush3.msra.mxu1 %v1176_v45  ;;  %v1532_v1 = vpop.permute.xlu0 %1531 }
 0xbe6   :  { %2092 = vmatmul.mubr.msk.f32.vlgmr.msra.gmra.mxu1 %vm78_vm0, %v2479_v43  ;;  %2094 = vmatprep.subr.mxu1 %v2282_v8 }
 0xbe7   :  { %2095 = vmatpush3.xpose.msk.msra.mxu1 %vm1138_vm3, %v73_v47  ;;  %2096 = vmatprep.mubr.msk.f32.mxu1 %vm2283_vm1, %v2282_v8 }
 0xbe8   :  { %2099 = vmatprep.subr.mxu1 %v1345_v48  ;;  %v1331_v61 = vpop.permute.xlu1 %1330 }
 0xbec   :  { %v1534_v63 = vpop.permute.xlu1 %1533 }
 0xbed   :  { %2135 = vmatpush3.msra.mxu0 %v1534_v63 }
 0xbee   :  { %2136 = vmatprep.subr.mxu0 %v2282_v8 }
 0xbef   :  { %2137 = vmatpush3.msra.mxu0 %v1532_v1 }
 0xbf0   :  { %v1530_v2 = vpop.permute.xlu1 %1529  ;;  %2138 = vmatprep.subr.mxu0 %v2282_v8 }
 0xbf1   :  { %2139 = vmatpush3.msra.mxu0 %v1530_v2 }
 0xbf2   :  { %2154 = vmatprep.subr.mxu0 %v2282_v8 }
 0xca6   :  { %v1249_v52 = vpop.f32.mrf.mxu1 }
 0xca7   :  { %2097 = vmatmul.mubr.msk.f32.vlgmr.msra.gmra.mxu1 %vm1138_vm3, %v1249_v52 }
 0xca8   :  { %2100 = vmatpush3.msra.mxu1 %v1345_v48  ;;  %v2093_v54 = vpop.f32.mrf.mxu1  ;;  %2115 = vmatprep.mubr.msk.f32.mxu1 %vm1138_vm3, %v1176_v45 }
 0xca9   :  { %2101 = vmatprep.subr.mxu1 %v1343_v49 }
 0xcaa   :  { %2102 = vmatpush3.msra.mxu1 %v1343_v49 }
 0xcab   :  { %2103 = vmatprep.subr.mxu1 %v1341_v50 }
 0xcac   :  { %2104 = vmatpush3.msra.mxu1 %v1341_v50 }
 0xcad   :  { %2105 = vmatprep.subr.mxu1 %v1339_v53 }
 0xcae   :  { %2106 = vmatpush3.msra.mxu1 %v1339_v53 }
 0xcaf   :  { %2107 = vmatprep.subr.mxu1 %v1337_v55 }
 0xcb0   :  { %2108 = vmatpush3.msra.mxu1 %v1337_v55 }
 0xcb1   :  { %2109 = vmatprep.subr.mxu1 %v1335_v56 }
 0xcb2   :  { %2110 = vmatpush3.msra.mxu1 %v1335_v56 }
 0xcb3   :  { %2111 = vmatprep.subr.mxu1 %v1333_v57 }
 0xcb4   :  { %2112 = vmatpush3.msra.mxu1 %v1333_v57 }
 0xcb5   :  { %2113 = vmatprep.subr.mxu1 %v1331_v61 }
 0xcb6   :  { %2114 = vmatpush3.msra.mxu1 %v1331_v61 }
 0xcb7   :  { %2116 = vmatmul.mubr.msk.f32.vlgmr.msra.gmra.mxu1 %vm1138_vm3, %v1178_v0  ;;  %2121 = vmatprep.subr.mxu1 %v2282_v8 }
 0xcb8   :  { %2118 = vmatprep.mubr.msk.f32.mxu1 %vm1138_vm3, %v1180_v44 }
 0xcbb   :  { %2119 = vmatmul.mubr.msk.f32.gmra.mxu1 %vm1138_vm3, %v1182_v27 }
 0xcbc   :  { %2129 = vmatprep.mubr.msk.f32.mxu1 %vm2283_vm1, %v2282_v8 }
 0xd67   :  { %v1325_v3 = vpop.f32.mrf.mxu1 }
 0xd68   :  { %1329 = vst.msk [vmem:[#allocation6] sm:$0xff] %vm170_vm2, %v1325_v3 }
 0xd69   :  { %v2098_v4 = vpop.f32.mrf.mxu1 }
 0xd77   :  { %v2117_v5 = vpop.f32.mrf.mxu1 }
 0xd78   :  { %v1452_v16 = vmul.f32 %v2117_v5, %v2423_v32 }
 0xd79   :  { %v1432_v6 = vpop.f32.mrf.mxu1 }
 0xd7a   :  { %v1451_v18 = vmul.f32 %v1432_v6, %v2418_v31  ;;  %v1527_v31 = vsub.s32 4, %v2377_v19 }
 0xd7b   :  { %v2120_v12 = vpop.f32.mrf.mxu1 }
 0xd7c   :  { %v1454_v13 = vmul.f32 %v2120_v12, %v2435_v38  ;;  %v1528_v38 = vrot.slane %v2383_v21, %v1527_v31 }
 0xd7d   :  { %v1442_v14 = vpop.f32.mrf.mxu1 }
 0xd7e   :  { %v1453_v15 = vmul.f32 %v1442_v14, %v2430_v37  ;;  %2122 = vmatpush3.msra.mxu1 %v1454_v13 }
 0xd7f   :  { %2123 = vmatprep.subr.mxu1 %v2282_v8 }
 0xd80   :  { %2124 = vmatpush3.msra.mxu1 %v1453_v15 }
 0xd81   :  { %2125 = vmatprep.subr.mxu1 %v2282_v8 }
 0xd82   :  { %2126 = vmatpush3.msra.mxu1 %v1452_v16 }
 0xd83   :  { %2127 = vmatprep.subr.mxu1 %v2282_v8 }
 0xd84   :  { %2128 = vmatpush3.msra.mxu1 %v1451_v18 }
 0xd85   :  { %2130 = vmatmul.mubr.msk.f32.vlgmr.msra.gmra.mxu1 %vm78_vm0, %v2479_v43  ;;  %2143 = vmatprep.subr.mxu1 %v2282_v8 }
 0xd86   :  { %2151 = vmatprep.mubr.msk.f32.mxu1 %vm2283_vm1, %v2282_v8  ;;  %2144 = vmatpush3.msra.mxu1 %v61_v35 }
 0xd87   :  { %2145 = vmatprep.subr.mxu1 %v2282_v8 }
 0xe45   :  { %v1521_v37 = vpop.f32.mrf.mxu1 }
 0xe46   :  { %2141 = vmatmul.mubr.msk.f32.vlgmr.msra.gmra.mxu0 %vm78_vm0, %v1521_v37 }
 0xe47   :  { %v2131_v32 = vpop.f32.mrf.mxu1  ;;  %2162 = vmatprep.mubr.msk.f32.mxu0 %vm2283_vm1, %v2282_v8  ;;  %2155 = vmatpush3.xpose.msra.mxu0 %v62_v40 }
 0xe48   :  { %2156 = vmatprep.subr.mxu0 %v2282_v8 }
 0xe4b   :  { %2157 = vmatpush3.xpose.msra.mxu0 %v58_v7 }
 0xe4c   :  { %2158 = vmatprep.subr.mxu0 %v2282_v8 }
 0xe4f   :  { %2159 = vmatpush3.xpose.msra.mxu0 %v54_v41 }
 0xe50   :  { %2160 = vmatprep.subr.mxu0 %v2282_v8 }
 0xe53   :  { %2161 = vmatpush3.xpose.msra.mxu0 %v50_v42 }
 0xf06   :  { %v1610_v20 = vpop.f32.mrf.mxu0 }
 0xf07   :  { %v1611_v22 = vadd.f32 %v1610_v20, %v1528_v38 }
 0xf08   :  { %v2142_v23 = vpop.f32.mrf.mxu0 }
 0xf09   :  { %v2702_v43 = vadd.f32 %v1611_v22, %v2491_v51  ;;  %v57_v51 = vld [vmem:[%s2753_s2 + $0x50] sm:$0xff] }
 0xf0a   :  { %2146 = vmatpush3.msra.mxu1 %v57_v51 }
 0xf0b   :  { %v1615_v24 = vsel %vm78_vm0, %v2702_v43, 0.0  ;;  %2147 = vmatprep.subr.mxu1 %v2282_v8 }
 0xf0c   :  { %1616 = vadd.xlane.f32.xlu0 %v1615_v24  ;;  %2148 = vmatpush3.msra.mxu1 %v53_v36 }
 0xf0d   :  { %2149 = vmatprep.subr.mxu1 %v2282_v8 }
 0xf0e   :  { %2150 = vmatpush3.msra.mxu1 %v49_v39 }
 0xf95   :  { %v1617_v25 = vpop.xlane.xlu0 %1616 }
 0xf96   :  { %v1618_v29 = vmul.f32 0.03125, %v1617_v25 }
 0xf98   :  { %v1619_v30 = vsub.f32 %v2702_v43, %v1618_v29 }
 0xf9a   :  { %v1620_v33 = vmul.f32 %v1619_v30, %v1619_v30 }
 0xf9c   :  { %v1621_v34 = vsel %vm78_vm0, %v1620_v33, 0.0 }
 0xf9d   :  { %1622 = vadd.xlane.f32.xlu1 %v1621_v34 }
0x1026   :  { %v1623_v17 = vpop.xlane.xlu1 %1622 }
0x1027   :  { %v1624_v9 = vmul.f32 0.03125, %v1623_v17 }
0x1029   :  { %v1625_v46 = vadd.f32 1e-05, %v1624_v9 }
0x102b   :  { %2211 = vrsqrt.f32 %v1625_v46 }
0x1038   :  { %v2212_v10 = vpop.eup %2211 }
0x1039   :  { %v1627_v11 = vmul.f32 %v2212_v10, %v1619_v30 }
0x103b   :  { %2152 = vmatmul.mubr.msk.f32.vlgmr.msra.gmra.mxu1 %vm78_vm0, %v1627_v11 }
0x10fb   :  { %v1701_v27 = vpop.f32.mrf.mxu1 }
0x10fc   :  { %v1702_v28 = vadd.f32 %v1701_v27, %v1631_v58 }
0x10fd   :  { %v2153_v8 = vpop.f32.mrf.mxu1 }
0x10fe   :  { %v1705_v44 = vmax.f32 %v1702_v28, 0.0 }
0x1100   :  { %2163 = vmatmul.mubr.f32.vlgmr.msra.gmra.mxu0 %v1705_v44 }
0x1101   :  { %2244 = shalt.err (!%p2241_p9)
}
0x1102   :  { %1801 = dma.vmem_to_hbm [thread:$0]  %s1799_s15, 128, %s2757_s6, [#allocation7]   ;;  %v1708_v59 = vsub.s32 6, %v2377_v19 }
0x1103   :  { %s2288_s19 = smov [#allocation5]  }
0x1104   :  { %v1709_v0 = vrot.slane %v2383_v21, %v1708_v59  ;;  %s1788_s3 = sshll.u32 %s2288_s19, 4  ;;  %s1789_s3 = int_to_ptr.vmem [resolvable:$true] %s1788_s3 }
0x1105   :  { %s2253_s20 = scalar_lea.vmem %s1789_s3, 128  ;;  %p2258_p11 = scmp.lt.s32.totalorder %s1789_s3, %s1789_s3 }
0x1106   :  { %p2254_p10 = scmp.ne.s32.totalorder %s1789_s3, %s2253_s20  ;;  %p2259_p12 = scmp.lt.s32.totalorder %s2253_s20, %s2253_s20 }
0x1108   :  { %p2260_p13 = por %p2259_p12, %p2258_p11 }
0x110a   :  { %p2261_p0 = pnand %p2260_p13, %p2254_p10 }
0x11c0   :  { %v1776_v60 = vpop.f32.mrf.mxu0 }
0x11c1   :  { %v1777_v45 = vadd.f32 %v1776_v60, %v1709_v0 }
0x11c2   :  { %v2164_v47 = vpop.f32.mrf.mxu0 }
0x11c3   :  { %v1780_v48 = vadd.f32 %v1777_v45, %v2702_v43 }
0x11c5   :  { %1781 = vst.msk [vmem:[#allocation5] sm:$0xff] %vm78_vm0, %v1780_v48 }
0x11c6   :  { %2264 = shalt.err (!%p2261_p0)
}
0x11c7   :  { %1791 = dma.vmem_to_hbm [thread:$0]  %s1789_s3, 128, %s2756_s5, [#allocation4]  }
0x11c8   :  { %2275 = dma.done.wait [#allocation4], 128  }
0x11c9   :  { %2276 = vsyncadd [#allocation4], 4294967168 }
0x11ca   :  { %2277 = dma.done.wait [#allocation7], 128  }
0x11cb   :  { %2278 = vsyncadd [#allocation7], 4294967168 }
0x11cc   :  { %1808 = vsyncpa [#allocation3], 1 }
0x11cd   :  { %1809 = vsyncpa [#allocation4], 1 }
0x11ce   :  { %1810 = vsyncpa [#allocation7], 1 }

</bundles_post_ra>
